<compile_context>
chip_gen: v7x
topology: tpu7x:2x2x1
jax: 0.10.0
libtpu: 0.0.40
codegen_flags: <defaults>
</compile_context>

<pallas_src>
import functools

import jax
import jax.numpy as jnp
import numpy as np
from jax.experimental import pallas as pl
from jax.experimental.pallas import tpu as pltpu


def _upsample_kernel(x_ref, e_ref, o_ref, *, precision):
    # x_ref: (tm, K) packed input rows
    # e_ref: (K, N)  one-hot expansion matrix (resident, fetched once)
    # o_ref: (tm, N) packed upsampled rows
    o_ref[...] = jnp.dot(
        x_ref[...],
        e_ref[...],
        precision=precision,
        preferred_element_type=jnp.float32,
    ).astype(o_ref.dtype)


def _sublane_multiple(dtype):
    # f32 -> 8, bf16/f16 -> 16, (int8/fp8 -> 32 if ever supported)
    return max(8, 32 // jnp.dtype(dtype).itemsize)


def _choose_lin(bch, W, s, k_cap=256):
    """Input rows packed per wide row (must divide B*C*H).

    Priorities (highest first):
      1. N = lin*W*s*s multiple of 128 -> unmasked, lane-dense output stores
      2. N >= 128                      -> at least one full lane row
      3. K = lin*W <= 64               -> full-E matmul stays mem-bound on v5e f32
      4. K as close to 64 as possible  -> densest input rows under that cap
    """
    cands = [l for l in range(1, bch + 1)
             if bch % l == 0 and (l == 1 or l * W <= k_cap)]

    def key(l):
        K = l * W
        N = K * s * s
        return (N % 128 == 0, N >= 128, K <= 64, -abs(K - 64))

    return max(cands, key=key)


def _choose_tm(m_wide, row_bytes, sublanes, target_bytes=4 << 20):
    """Wide rows per grid step: ~4 MiB output blocks, dtype-aware sublane
    multiple, grid >= 2 (even preferred, v7x has 2 TCs), cdiv tail fallback."""
    if m_wide <= sublanes:
        return m_wide  # full second-to-last dim is always a legal block shape
    bytes_cap = (target_bytes // row_bytes) // sublanes * sublanes
    half_cap = (m_wide // 2) // sublanes * sublanes          # keep grid >= 2
    cap = max(sublanes, min(half_cap, bytes_cap))
    best = None
    for tm in range(cap, 0, -sublanes):
        if m_wide % tm == 0:
            g = m_wide // tm
            score = (g % 2 == 0, tm)                          # even grid, then big
            if best is None or score > best[0]:
                best = (score, tm)
    if best is not None:
        return best[1]
    return cap  # no exact divisor: grid = cdiv, Pallas clips the tail block


def _expansion_matrix(K, W, s, dtype):
    """One-hot E[p, j] = 1 iff packed-input element p is the NN source of
    packed-output element j.  Built once on the host."""
    col = W * s
    N = K * s * s
    j = np.arange(N)
    src = (j // col) // s * W + (j % col) // s
    return jnp.asarray(np.arange(K)[:, None] == src[None, :], dtype=dtype)


def upsample(x, stride=2):
    """Equivalent of darknet Upsample(stride).forward(x) for NCHW float input."""
    assert x.ndim == 4
    assert jnp.issubdtype(x.dtype, jnp.floating), "float dtypes only"
    B, C, H, W = x.shape
    s = int(stride)
    if s == 1:
        return x

    bch = B * C * H
    lin = _choose_lin(bch, W, s)
    K = lin * W
    N = K * s * s
    m_wide = bch // lin
    itemsize = jnp.dtype(x.dtype).itemsize
    sub = _sublane_multiple(x.dtype)
    tm = _choose_tm(m_wide, N * itemsize, sub)
    grid = pl.cdiv(m_wide, tm)

    x2 = x.reshape(m_wide, K)                     # free row-major view
    e = _expansion_matrix(K, W, s, x.dtype)       # <= ~1 MiB, resident in VMEM

    # HIGHEST (multi-pass bf16) keeps f32 bit-exact through the one-hot matmul;
    # bf16 inputs are exact with the default single pass.
    precision = jax.lax.Precision.HIGHEST if x.dtype == jnp.float32 else None
    kernel = functools.partial(_upsample_kernel, precision=precision)

    out = pl.pallas_call(
        kernel,
        out_shape=jax.ShapeDtypeStruct((m_wide, N), x.dtype),
        grid_spec=pltpu.PrefetchScalarGridSpec(
            num_scalar_prefetch=0,
            grid=(grid,),
            in_specs=[
                pl.BlockSpec((tm, K), lambda i: (i, 0)),
                pl.BlockSpec((K, N), lambda i: (0, 0)),   # constant -> fetched once
            ],
            out_specs=pl.BlockSpec((tm, N), lambda i: (i, 0)),
        ),
        compiler_params=pltpu.CompilerParams(
            dimension_semantics=("parallel",),
            vmem_limit_bytes=48 * 1024 * 1024,
        ),
        cost_estimate=pl.CostEstimate(
            flops=2 * m_wide * K * N,
            transcendentals=0,
            bytes_accessed=int(x.size) * (1 + s * s) * itemsize + K * N * itemsize,
        ),
    )(x2, e)

    return out.reshape(B, C, H * s, W * s)        # free row-major view


def _reference(x, s):
    return jnp.repeat(jnp.repeat(x, s, axis=2), s, axis=3)


if __name__ == "__main__":
    key = jax.random.PRNGKey(0)
    k1, k2 = jax.random.split(key)

    # Friendly shape: lane-dense N, exact-divisor grid.
    x = jax.random.normal(k1, (2, 4, 16, 16), dtype=jnp.float32)
    y = jax.block_until_ready(upsample(x, stride=2))
    assert y.shape == (2, 4, 32, 32), y.shape
    assert y.dtype == x.dtype
    assert jnp.array_equal(y, _reference(x, 2)), "mismatch (2,4,16,16)"

    # Awkward shape: odd W, N % 128 != 0, non-dividing grid (clipped tail block).
    x2 = jax.random.normal(k2, (1, 3, 13, 13), dtype=jnp.float32)
    y2 = jax.block_until_ready(upsample(x2, stride=2))
    assert y2.shape == (1, 3, 26, 26), y2.shape
    assert jnp.array_equal(y2, _reference(x2, 2)), "mismatch (1,3,13,13)"

    # stride=1 passthrough
    assert jnp.array_equal(upsample(x, stride=1), x)

    print("KERNEL_OK")
</pallas_src>

<mosaic_0001>
module attributes {stable_mosaic.version = 11 : i64} {
  func.func @_upsample_kernel(%arg0: i32, %arg1: memref<16x64xf32, #tpu.memory_space<vmem>>, %arg2: memref<64x256xf32, #tpu.memory_space<vmem>>, %arg3: memref<16x256xf32, #tpu.memory_space<vmem>>) attributes {dimension_semantics = [#tpu.dimension_semantics<parallel>], iteration_bounds = array<i64: 2>, scalar_prefetch = 0 : i64, scratch_operands = 0 : i64, tpu.core_type = #tpu.core_type<tc>, window_params = [{transform_indices = @transform_0, window_bounds = array<i64: 16, 64>}, {pipeline_mode = #tpu.pipeline_mode<synchronous>, transform_indices = @transform_1, window_bounds = array<i64: 64, 256>}, {transform_indices = @transform_2, window_bounds = array<i64: 16, 256>}]} {
    %c0 = arith.constant 0 : index
    %c0_0 = arith.constant 0 : index
    %0 = vector.load %arg1[%c0, %c0_0] : memref<16x64xf32, #tpu.memory_space<vmem>>, vector<16x64xf32>
    %c0_1 = arith.constant 0 : index
    %c0_2 = arith.constant 0 : index
    %1 = vector.load %arg2[%c0_1, %c0_2] : memref<64x256xf32, #tpu.memory_space<vmem>>, vector<64x256xf32>
    %cst = arith.constant dense<0.000000e+00> : vector<16x256xf32>
    %2 = tpu.matmul %0, %1, %cst {dimension_numbers = #tpu.dot_dimension_numbers<[1], [0], [0], [1], [0, 0, 1, 1], [], []>, precision = #tpu.contract_precision<fp32>} : vector<16x64xf32>, vector<64x256xf32>, vector<16x256xf32> -> vector<16x256xf32>
    %c0_3 = arith.constant 0 : index
    %c0_4 = arith.constant 0 : index
    %3 = vector.load %arg3[%c0_3, %c0_4] : memref<16x256xf32, #tpu.memory_space<vmem>>, vector<16x256xf32>
    tpu.vector_store %arg3[%c0_3, %c0_4], %2 {strides = array<i32>} : memref<16x256xf32, #tpu.memory_space<vmem>>, vector<16x256xf32>,
    return
  }
  func.func @transform_0(%arg0: i32) -> (i32, i32) {
    %c0_i32 = arith.constant 0 : i32
    %c0_i32_0 = arith.constant 0 : i32
    return %arg0, %c0_i32 : i32, i32
  }
  func.func @transform_1(%arg0: i32) -> (i32, i32) {
    %c0_i32 = arith.constant 0 : i32
    %c0_i32_0 = arith.constant 0 : i32
    %c0_i32_1 = arith.constant 0 : i32
    return %c0_i32, %c0_i32_0 : i32, i32
  }
  func.func @transform_2(%arg0: i32) -> (i32, i32) {
    %c0_i32 = arith.constant 0 : i32
    %c0_i32_0 = arith.constant 0 : i32
    return %arg0, %c0_i32 : i32, i32
  }
}

</mosaic_0001>

<bundles_post_ra>
// kernel: tpu_custom_call.1
= control target key start
LH: loop header
LB: loop body
LE: loop exit
PB: predicated region body
PF: predicated region fallthrough
CT: control target
= control target key end

     0   :  { %7 = vsyncpa [#allocation3], 0  ;;  %s1714_s0 = inlined_call_operand.hbm [shape: f32[32,64], index: 0, kind: input, shape index: {}]   ;;  %s1715_s1 = inlined_call_operand.hbm [shape: f32[64,256], index: 1, kind: input, shape index: {}]   ;;  %s1716_s2 = inlined_call_operand.hbm [shape: f32[32,256], index: 2, kind: output, shape index: {}]  }
   0x1   :  { %9 = vsyncpa [#allocation3 + $0x1], 0 }
   0x2   :  { %10 = vsyncpa [#allocation6], 0 }
   0x3   :  { %11 = vsyncpa [#allocation4], 0 }
   0x4   :  { %13 = vsyncpa [#allocation4 + $0x1], 0  ;;  %s1357_s9 = smov 0   ;;  %s1359_s10 = smov 0  }
   0x5   :  { %s1361_s11 = smov 0   ;;  %s1363_s12 = smov 0  }
   0x6 LB: > { %s1378_s13 = sadd.s32 4294967295, %s1330_s12   ;;  %s1002_s14 = sadd.s32 4294967294, %s1330_s12   ;;  %s1330_s12 = sphi %s1363_s12, %s1736_s12   ;;  %s1326_s11 = sphi %s1361_s11, %s1735_s11   ;;  %s1322_s10 = sphi %s1359_s10, %s1734_s10   ;;  %s1318_s9 = sphi %s1357_s9, %s1733_s9  }
   0x7   : > { %p39_p0 = scmp.ne.s32.totalorder %s1322_s10, %s1318_s9  ;;  %p1717_p1 = scmp.eq.s32.totalorder %s1378_s13, 0 }
   0x8   : > { %p90_p3 = scmp.eq.s32.totalorder %s1002_s14, 1  ;;  %p1003_p5 = scmp.ge.s32.totalorder %s1330_s12, 1 }
   0x9   : > { %p1387_p4 = por %p1717_p1, %p39_p0  ;;  %p97_p7 = scmp.lt.s32.totalorder %s1330_s12, 3 }
   0xa   : > { %p1392_p6 = por %p90_p3, %p39_p0  ;;  %s1332_s18 = smov [#allocation5]  }
   0xb   : > { %s1720_s15 = scalar_select %p1387_p4, 1, 0 }
   0xc   : > { %s1721_s16 = scalar_select %p1392_p6, 1, 0 }
   0xd   : > { %p1397_p8 = pnand %p1003_p5, %p97_p7  ;;  %s109_s19 = sshll.u32 %s1332_s18, 4  ;;  %s1401_s19 = int_to_ptr.vmem [resolvable:$true] %s109_s19 }
   0xe   : > { %s1413_s21 = sadd.s32 1, %s1330_s12   ;;  %s26_s22 = sadd.s32 1, %s1326_s11 }
   0xf   : > { %s1722_s17 = scalar_select %p1397_p8, 1, 0 }
  0x10   : > { %p1146_p9 = pneg %p1397_p8  ;;  %s23_s23 = ssub.s32 %s1330_s12, %s1413_s21 }
  0x11   : > { %s1202_s26 = scalar_lea.hbm %s1715_s1, 2048 }
  0x12   : > { %p1408_p11 = pnand %p1146_p9, %p1717_p1  ;;  %p1203_p12 = scmp.ne.s32.totalorder %s1715_s1, %s1202_s26 }
  0x13   : > { %p1209_p5 = scmp.lt.u32.totalorder %s1202_s26, %s1715_s1 }
  0x14   : > { %p1204_p13 = pneg %p1408_p11 }
  0x16   : > { %p1205_p0 = pnand %p1204_p13, %p1203_p12 }
  0x18   : > { %p1206_p3 = pneg %p1205_p0 }
  0x1a   : > { %p1211_p7 = pnand %p1209_p5, %p1206_p3 }
  0x1c   : > { %1214 = shalt.err (!%p1211_p7)
}
  0x1d   : > { %s1215_s3 = scalar_lea.vmem %s1401_s19, 2048  ;;  %p1223_p2 = scmp.lt.s32.totalorder %s1401_s19, %s1401_s19 }
  0x1e   : > { %p1216_p9 = scmp.ne.s32.totalorder %s1401_s19, %s1215_s3  ;;  %p1224_p6 = scmp.lt.s32.totalorder %s1215_s3, %s1215_s3 }
  0x20   : > { %p1218_p10 = pnand %p1216_p9, %p1204_p13  ;;  %p1225_p4 = por %p1224_p6, %p1223_p2 }
  0x22   : > { %p1219_p1 = pneg %p1218_p10 }
  0x24   : > { %p1226_p8 = pnand %p1225_p4, %p1219_p1 }
  0x26   : > { %1229 = shalt.err (!%p1226_p8)
}
  0x27   : > { %s1333_s4 = smov 256   ;;  %s1334_s5 = smov 16  }
  0x28   : > { %1149 = dma.hbm_to_vmem [thread:$0]  (!%p1408_p11), %s1715_s1, 2048, %s1401_s19, [#allocation6], %s1333_s4, %s1333_s4, %s1334_s5  }
  0x29   : > { %p24_p2 = scmp.eq.s32.totalorder %s23_s23, 0  ;;  %p33_p1 = scmp.ne.s32.totalorder %s1326_s11, %s1322_s10 }
  0x2a   : > { %p34_p4 = scmp.eq.s32.totalorder %s1330_s12, 0  ;;  %p1159_p6 = scmp.lt.s32.totalorder %s1330_s12, 2 }
  0x2b   : > { %s1444_s8 = scalar_select %p24_p2, %s1326_s11, %s26_s22  }
  0x2c   : > { %p35_p8 = por %p34_p4, %p33_p1  ;;  %p1724_p10 = scmp.eq.s32.totalorder %s1378_s13, 1 }
  0x2d   : > { %s123_s18 = sand.u32 1, %s1326_s11   ;;  %s1019_s24 = sshll.u32 %s1330_s12, 8 }
  0x2e   : > { %p1448_p12 = por %p1724_p10, %p33_p1  ;;  %s1006_s25 = sshll.u32 %s123_s18, 4 }
  0x2f   : > { %s1457_s27 = scalar_lea.hbm %s1714_s0, %s1019_s24  ;;  %s127_s19 = scalar_lea.vmem [#allocation2], %s1006_s25 }
  0x30   : > { %s134_s22 = sshll.u32 %s127_s19, 4  ;;  %p1459_p11 = pnand %p1159_p6, %p35_p8  ;;  %s1463_s22 = int_to_ptr.vmem [resolvable:$true] %s134_s22 }
  0x31   : > { %s1465_s28 = scalar_lea.sflag [#allocation3], %s123_s18  ;;  %s1230_s29 = scalar_lea.hbm %s1457_s27, 256 }
  0x32   : > { %p1231_p13 = scmp.ne.s32.totalorder %s1457_s27, %s1230_s29  ;;  %p1232_p0 = pneg %p1459_p11 }
  0x33   : > { %s1235_s4 = scalar_lea.hbm %s1714_s0, 512  ;;  %p1236_p7 = scmp.lt.u32.totalorder %s1457_s27, %s1714_s0 }
  0x34   : > { %p1233_p3 = pnand %p1232_p0, %p1231_p13  ;;  %p1237_p9 = scmp.lt.u32.totalorder %s1235_s4, %s1230_s29 }
  0x35   : > { %p1239_p1 = scmp.lt.u32.totalorder %s1230_s29, %s1457_s27 }
  0x36   : > { %p1234_p5 = pneg %p1233_p3  ;;  %p1238_p2 = por %p1237_p9, %p1236_p7 }
  0x38   : > { %p1240_p4 = por %p1239_p1, %p1238_p2 }
  0x3a   : > { %p1241_p6 = pnand %p1240_p4, %p1234_p5 }
  0x3c   : > { %1244 = shalt.err (!%p1241_p6)
}
  0x3d   : > { %s1245_s7 = scalar_lea.vmem %s1463_s22, 256  ;;  %s1335_s18 = smov [#allocation2]  }
  0x3e   : > { %p1246_p8 = scmp.ne.s32.totalorder %s1463_s22, %s1245_s7  ;;  %s1250_s24 = sshll.u32 %s1335_s18, 4  ;;  %s1251_s24 = int_to_ptr.vmem [resolvable:$false] %s1250_s24 }
  0x3f   : > { %s1252_s25 = scalar_lea.vmem %s1251_s24, 512  ;;  %p1253_p3 = scmp.lt.s32.totalorder %s1463_s22, %s1251_s24 }
  0x40   : > { %p1248_p10 = pnand %p1246_p8, %p1232_p0  ;;  %p1254_p7 = scmp.lt.s32.totalorder %s1252_s25, %s1245_s7 }
  0x42   : > { %p1249_p13 = pneg %p1248_p10  ;;  %p1255_p9 = por %p1254_p7, %p1253_p3 }
  0x44   : > { %p1256_p2 = pnand %p1255_p9, %p1249_p13 }
  0x46   : > { %1259 = shalt.err (!%p1256_p2)
}
  0x47   : > { %s1336_s20 = smov 128   ;;  %s1337_s26 = smov 8  }
  0x48   : > { %1153 = dma.hbm_to_vmem [thread:$0]  (!%p1459_p11), %s1457_s27, 256, %s1463_s22, %s1465_s28, %s1336_s20, %s1336_s20, %s1337_s26  }
  0x49   : > { %p1727_p0 = scmp.ne.s32.totalorder %s1722_s17, 0 }
  0x4a   : > { %s1496_s19 = sand.u32 (!%p1727_p0), 1, %s1322_s10   ;;  %p1728_p5 = scmp.ne.s32.totalorder (!%p1727_p0), %s1720_s15, 0 }
  0x4b   : > { %146 = sbr.rel (%p1727_p0) target bundleno = 376 (0x178), region = 28  ;;  %s1010_s29 = sshll.u32 (!%p1727_p0), %s1496_s19, 4 }
  0x4c   : > { %s149_s30 = scalar_lea.sflag (!%p1727_p0), [#allocation3], %s1496_s19  ;;  %s1500_s3 = scalar_lea.vmem (!%p1727_p0), [#allocation2], %s1010_s29 }
  0x52   : > { %1305 = dma.done.wait (%p1728_p5), %s149_s30, 256  }
  0x53   : > { %1307 = vsyncadd (%p1728_p5), %s149_s30, 4294967040  ;;  %p1729_p11 = scmp.eq.s32.totalorder %s1378_s13, 0 }
  0x55   : > { %1309 = dma.done.wait (%p1729_p11), [#allocation6], 2048   ;;  %p1730_p1 = pmov %p1729_p11 }
  0x56   : > { %v1338_v0 = vmov 0.0   ;;  %v182_v1 = vld [vmem:[#allocation5 + $0x8] sm:$0xff]  ;;  %v184_v2 = vld [vmem:[#allocation5 + $0x18] sm:$0xff]  ;;  %v181_v3 = vld [vmem:[#allocation5] sm:$0xff]  ;;  %vm197_vm0 = vcmask 523264   ;;  %s1012_s15 = sshll.u32 %s1496_s19, 5 }
  0x57   : > { %1311 = vsyncadd (%p1730_p1), [#allocation6], 4294965248  ;;  %284 = vmatprep.mubr.f32.mxu1 %v1338_v0  ;;  %659 = vmatprep.mubr.f32.mxu0 %v1338_v0  ;;  %v204_v4 = vand.u32 4294901760, %v182_v1  ;;  %v208_v5 = vand.u32 4294901760, %v184_v2  ;;  %v183_v6 = vld [vmem:[#allocation5 + $0x10] sm:$0xff]  ;;  %v206_v7 = vand.u32 4294901760, %v181_v3 }
  0x58   : > { %v186_v8 = vld [vmem:[#allocation5 + $0x28] sm:$0xff]  ;;  %v188_v9 = vld [vmem:[#allocation5 + $0x38] sm:$0xff]  ;;  %v210_v10 = vand.u32 4294901760, %v183_v6  ;;  %v185_v13 = vld [vmem:[#allocation5 + $0x20] sm:$0xff]  ;;  %s176_s17 = scalar_lea.vmem [#allocation7], %s1012_s15  ;;  %s1021_s22 = sshll.u32 %s1378_s13, 9 }
  0x59   : > { %v212_v11 = vand.u32 4294901760, %v186_v8  ;;  %v216_v12 = vand.u32 4294901760, %v188_v9  ;;  %v187_v14 = vld [vmem:[#allocation5 + $0x30] sm:$0xff]  ;;  %v190_v15 = vld [vmem:[#allocation5 + $0x48] sm:$0xff]  ;;  %v1512_v16 = vpack.c.bf16 %v208_v5, %v204_v4  ;;  %v1514_v17 = vsub.f32 %v182_v1, %v204_v4  ;;  %v192_v19 = vld [vmem:[#allocation5 + $0x58] sm:$0xff]  ;;  %s919_s27 = sshll.u32 %s176_s17, 4  ;;  %s1670_s4 = scalar_lea.hbm %s1716_s2, %s1021_s22  ;;  %s1665_s27 = int_to_ptr.vmem [resolvable:$true] %s919_s27 }
  0x5a   : > { %v1516_v18 = vsub.f32 %v184_v2, %v208_v5  ;;  %v189_v20 = vld [vmem:[#allocation5 + $0x40] sm:$0xff]  ;;  %v191_v21 = vld [vmem:[#allocation5 + $0x50] sm:$0xff]  ;;  %v1518_v22 = vpack.c.bf16 %v210_v10, %v206_v7  ;;  %v1520_v23 = vsub.f32 %v181_v3, %v206_v7  ;;  %v1522_v24 = vsub.f32 %v183_v6, %v210_v10  ;;  %v194_v26 = vld [vmem:[#allocation5 + $0x68] sm:$0xff]  ;;  %s905_s13 = scalar_lea.sflag [#allocation4], %s1496_s19  ;;  %s1260_s5 = scalar_lea.vmem %s1665_s27, 512 }
  0x5b   : > { %v1524_v25 = vpack.c.bf16 %v216_v12, %v212_v11  ;;  %v196_v27 = vld [vmem:[#allocation5 + $0x78] sm:$0xff]  ;;  %1023 = vmatprep.subr.bf16.mxu1 %v1512_v16  ;;  %1071 = vmatprep.subr.bf16.mxu0 %v1512_v16  ;;  %v1528_v28 = vsub.f32 %v186_v8, %v212_v11  ;;  %v214_v29 = vand.u32 4294901760, %v185_v13  ;;  %v218_v30 = vand.u32 4294901760, %v187_v14  ;;  %v193_v40 = vld [vmem:[#allocation5 + $0x60] sm:$0xff]  ;;  %v195_v41 = vld [vmem:[#allocation5 + $0x70] sm:$0xff]  ;;  %p1261_p4 = scmp.ne.s32.totalorder %s1665_s27, %s1260_s5  ;;  %s1339_s6 = smov [#allocation7]  }
  0x5c   : > { %v220_v31 = vand.u32 4294901760, %v190_v15  ;;  %1025 = vmatpush1.bf16.msra.mxu1 %v1518_v22  ;;  %1073 = vmatpush1.bf16.msra.mxu0 %v1518_v22  ;;  %v224_v32 = vand.u32 4294901760, %v192_v19  ;;  %v222_v33 = vand.u32 4294901760, %v189_v20  ;;  %v226_v34 = vand.u32 4294901760, %v191_v21  ;;  %v179_v46 = vld [vmem:[%s1500_s3] sm:$0xff]  ;;  %s1264_s7 = sshll.u32 %s1339_s6, 4  ;;  %s1265_s7 = int_to_ptr.vmem [resolvable:$false] %s1264_s7 }
  0x5d   : > { %v228_v35 = vand.u32 4294901760, %v194_v26  ;;  %1027 = vmatprep.subr.bf16.mxu1 %v1524_v25  ;;  %v1533_v36 = vsub.f32 %v188_v9, %v216_v12  ;;  %1075 = vmatprep.subr.bf16.mxu0 %v1524_v25  ;;  %v1536_v37 = vpack.c.bf16 %v218_v30, %v214_v29  ;;  %v1538_v38 = vsub.f32 %v185_v13, %v214_v29  ;;  %p1262_p6 = pnand %p1261_p4, %p1448_p12  ;;  %s1266_s18 = scalar_lea.vmem %s1265_s7, 1024 }
  0x5e   : > { %v232_v39 = vand.u32 4294901760, %v196_v27  ;;  %v1540_v42 = vsub.f32 %v187_v14, %v218_v30  ;;  %v1542_v43 = vpack.c.bf16 %v224_v32, %v220_v31  ;;  %v1544_v44 = vsub.f32 %v190_v15, %v220_v31  ;;  %p1267_p10 = scmp.lt.s32.totalorder %s1665_s27, %s1265_s7  ;;  %p1268_p13 = scmp.lt.s32.totalorder %s1266_s18, %s1260_s5 }
  0x5f   : > { %v1546_v45 = vsub.f32 %v192_v19, %v224_v32  ;;  %v1549_v47 = vpack.c.bf16 %v226_v34, %v222_v33  ;;  %v1551_v48 = vsub.f32 %v189_v20, %v222_v33  ;;  %v1553_v49 = vsub.f32 %v191_v21, %v226_v34  ;;  %p1263_p8 = pneg %p1262_p6 }
  0x60   : > { %v1555_v50 = vpack.c.bf16 %v232_v39, %v228_v35  ;;  %1029 = vmatpush1.bf16.msra.mxu1 %v1536_v37  ;;  %1077 = vmatpush1.bf16.msra.mxu0 %v1536_v37  ;;  %v1559_v51 = vsub.f32 %v194_v26, %v228_v35  ;;  %v230_v52 = vand.u32 4294901760, %v193_v40  ;;  %v234_v53 = vand.u32 4294901760, %v195_v41  ;;  %p1269_p3 = por %p1268_p13, %p1267_p10 }
  0x61   : > { %v309_v54 = vand.u32 4294901760, %v1514_v17  ;;  %1031 = vmatprep.subr.bf16.mxu1 %v1542_v43  ;;  %1079 = vmatprep.subr.bf16.mxu0 %v1542_v43  ;;  %v321_v55 = vand.u32 4294901760, %v1516_v18  ;;  %v199_v56 = vsel %vm197_vm0, %v179_v46, 0  ;;  %v315_v57 = vand.u32 4294901760, %v1520_v23 }
  0x62   : > { %v327_v58 = vand.u32 4294901760, %v1522_v24  ;;  %v1568_v59 = vsub.f32 %v196_v27, %v232_v39  ;;  %v1570_v60 = vpack.c.bf16 %v234_v53, %v230_v52  ;;  %v1572_v61 = vsub.f32 %v193_v40, %v230_v52  ;;  %p1270_p7 = pnand %p1269_p3, %p1263_p8 }
  0x63   : > { %v310_v62 = vsub.f32 %v1514_v17, %v309_v54  ;;  %v1575_v63 = vsub.f32 %v195_v41, %v234_v53  ;;  %v322_v1 = vsub.f32 %v1516_v18, %v321_v55  ;;  %v1578_v2 = vand.u32 4294901760, %v199_v56 }
  0x64   : > { %v316_v3 = vsub.f32 %v1520_v23, %v315_v57  ;;  %1033 = vmatpush1.bf16.msra.mxu1 %v1549_v47  ;;  %1081 = vmatpush1.bf16.msra.mxu0 %v1549_v47  ;;  %v1086_v5 = vpack.c.bf16 %v321_v55, %v309_v54  ;;  %v328_v6 = vsub.f32 %v1522_v24, %v327_v58  ;;  %v333_v7 = vand.u32 4294901760, %v1528_v28 }
  0x65   : > { %v311_v4 = vand.u32 4294901760, %v310_v62  ;;  %1035 = vmatprep.subr.bf16.mxu1 %v1555_v50  ;;  %1083 = vmatprep.subr.bf16.mxu0 %v1555_v50  ;;  %v323_v8 = vand.u32 4294901760, %v322_v1  ;;  %v1588_v9 = vsub.f32 %v199_v56, %v1578_v2  ;;  %v345_v11 = vand.u32 4294901760, %v1533_v36  ;;  %v180_v56 = vld [vmem:[%s1500_s3 + $0x8] sm:$0xff] }
  0x66   : > { %v317_v10 = vand.u32 4294901760, %v316_v3  ;;  %v329_v12 = vand.u32 4294901760, %v328_v6  ;;  %v334_v13 = vsub.f32 %v1528_v28, %v333_v7  ;;  %v339_v14 = vand.u32 4294901760, %v1538_v38 }
  0x67   : > { %v351_v15 = vand.u32 4294901760, %v1540_v42  ;;  %v1038_v19 = vpack.c.bf16 %v323_v8, %v311_v4  ;;  %v287_v20 = vand.u32 4294901760, %v1588_v9  ;;  %v1088_v21 = vpack.c.bf16 %v327_v58, %v315_v57 }
  0x68   : > { %v346_v26 = vsub.f32 %v1533_v36, %v345_v11  ;;  %1037 = vmatpush1.bf16.msra.mxu1 %v1570_v60  ;;  %1085 = vmatpush1.bf16.msra.mxu0 %v1570_v60  ;;  %v335_v27 = vand.u32 4294901760, %v334_v13  ;;  %v1090_v29 = vpack.c.bf16 %v345_v11, %v333_v7  ;;  %v340_v30 = vsub.f32 %v1538_v38, %v339_v14 }
  0x69   : > { %v352_v31 = vsub.f32 %v1540_v42, %v351_v15  ;;  %1039 = vmatprep.subr.bf16.mxu1 %v1038_v19  ;;  %1087 = vmatprep.subr.bf16.mxu0 %v1086_v5  ;;  %v288_v32 = vsub.f32 %v1588_v9, %v287_v20  ;;  %v1040_v33 = vpack.c.bf16 %v329_v12, %v317_v10  ;;  %v357_v35 = vand.u32 4294901760, %v1544_v44 }
  0x6a   : > { %v347_v34 = vand.u32 4294901760, %v346_v26  ;;  %v341_v39 = vand.u32 4294901760, %v340_v30  ;;  %v369_v41 = vand.u32 4294901760, %v1546_v45  ;;  %v363_v46 = vand.u32 4294901760, %v1551_v48 }
  0x6b   : > { %v353_v40 = vand.u32 4294901760, %v352_v31  ;;  %v289_v52 = vand.u32 4294901760, %v288_v32  ;;  %663 = vmatmul.mubr.f32.vlgmr.msra.gmra.mrb[0].mxu0 %v287_v20  ;;  %v358_v54 = vsub.f32 %v1544_v44, %v357_v35  ;;  %v375_v55 = vand.u32 4294901760, %v1553_v49 }
  0x6c   : > { %v1042_v53 = vpack.c.bf16 %v347_v34, %v335_v27  ;;  %1089 = vmatpush1.bf16.msra.mxu0 %v1088_v21  ;;  %v1092_v58 = vpack.c.bf16 %v351_v15, %v339_v14  ;;  %v370_v62 = vsub.f32 %v1546_v45, %v369_v41  ;;  %v364_v1 = vsub.f32 %v1551_v48, %v363_v46 }
  0x6d   : > { %v1044_v57 = vpack.c.bf16 %v353_v40, %v341_v39  ;;  %290 = vmatmul.mubr.f32.vlgmr.msra.gmra.mrb[0].mxu1 %v289_v52  ;;  %1091 = vmatprep.subr.bf16.mxu0 %v1090_v29  ;;  %v359_v3 = vand.u32 4294901760, %v358_v54  ;;  %v1094_v4 = vpack.c.bf16 %v369_v41, %v357_v35  ;;  %v376_v5 = vsub.f32 %v1553_v49, %v375_v55 }
  0x6e   : > { %v381_v6 = vand.u32 4294901760, %v1559_v51  ;;  %1041 = vmatpush1.bf16.msra.mxu1 %v1040_v33  ;;  %v371_v7 = vand.u32 4294901760, %v370_v62  ;;  %v365_v8 = vand.u32 4294901760, %v364_v1  ;;  %295 = vmatprep.mubr.f32.mxu1 %v1338_v0  ;;  %v393_v10 = vand.u32 4294901760, %v1568_v59 }
  0x6f   : > { %v202_v11 = vsel %vm197_vm0, %v180_v56, 0  ;;  %1043 = vmatprep.subr.bf16.mxu1 %v1042_v53  ;;  %v377_v12 = vand.u32 4294901760, %v376_v5  ;;  %668 = vmatprep.mubr.f32.mxu0 %v1338_v0  ;;  %v387_v15 = vand.u32 4294901760, %v1572_v61  ;;  %v1096_v20 = vpack.c.bf16 %v375_v55, %v363_v46 }
  0x70   : > { %v382_v13 = vsub.f32 %v1559_v51, %v381_v6  ;;  %v1616_v14 = vand.u32 4294901760, %v202_v11  ;;  %1093 = vmatpush1.bf16.msra.mxu0 %v1092_v58  ;;  %v1046_v19 = vpack.c.bf16 %v371_v7, %v359_v3  ;;  %v394_v21 = vsub.f32 %v1568_v59, %v393_v10 }
  0x71   : > { %v399_v26 = vand.u32 4294901760, %v1575_v63  ;;  %1095 = vmatprep.subr.bf16.mxu0 %v1094_v4  ;;  %v1098_v29 = vpack.c.bf16 %v393_v10, %v381_v6  ;;  %v388_v31 = vsub.f32 %v1572_v61, %v387_v15  ;;  %v1048_v32 = vpack.c.bf16 %v377_v12, %v365_v8 }
  0x72   : > { %v383_v27 = vand.u32 4294901760, %v382_v13  ;;  %v297_v30 = vsub.f32 %v202_v11, %v1616_v14  ;;  %1045 = vmatpush1.bf16.msra.mxu1 %v1044_v57  ;;  %v395_v33 = vand.u32 4294901760, %v394_v21  ;;  %v1054_v55 = vpack.c.bf16 %v1516_v18, %v1514_v17 }
  0x73   : > { %v400_v34 = vsub.f32 %v1575_v63, %v399_v26  ;;  %1047 = vmatprep.subr.bf16.mxu1 %v1046_v19  ;;  %v389_v39 = vand.u32 4294901760, %v388_v31  ;;  %v1100_v46 = vpack.c.bf16 %v399_v26, %v387_v15  ;;  %v1056_v56 = vpack.c.bf16 %v1522_v24, %v1520_v23 }
  0x74   : > { %v298_v35 = vand.u32 4294901760, %v297_v30  ;;  %1097 = vmatpush1.bf16.msra.mxu0 %v1096_v20  ;;  %v1050_v40 = vpack.c.bf16 %v395_v33, %v383_v27  ;;  %v1058_v57 = vpack.c.bf16 %v1533_v36, %v1528_v28  ;;  %v1062_v17 = vpack.c.bf16 %v1546_v45, %v1544_v44 }
  0x75   : > { %v401_v41 = vand.u32 4294901760, %v400_v34  ;;  %1099 = vmatprep.subr.bf16.mxu0 %v1098_v29  ;;  %v1064_v18 = vpack.c.bf16 %v1553_v49, %v1551_v48  ;;  %v1068_v23 = vpack.c.bf16 %v1575_v63, %v1572_v61 }
  0x76   : > { %v299_v52 = vsub.f32 %v297_v30, %v298_v35  ;;  %672 = vmatmul.mubr.f32.gmra.mrb[2].mxu0 %v298_v35  ;;  %1049 = vmatpush1.bf16.msra.mxu1 %v1048_v32 }
  0x77   : > { %v1052_v53 = vpack.c.bf16 %v401_v41, %v389_v39  ;;  %790 = vmatprep.mubr.f32.mxu0 %v1338_v0  ;;  %1051 = vmatprep.subr.bf16.mxu1 %v1050_v40 }
  0x78   : > { %v300_v54 = vand.u32 4294901760, %v299_v52  ;;  %1101 = vmatpush1.bf16.msra.mxu0 %v1100_v46 }
  0x79   : > { %1103 = vmatprep.subr.bf16.mxu0 %v1512_v16  ;;  %v1060_v16 = vpack.c.bf16 %v1540_v42, %v1538_v38 }
  0x7a   : > { %301 = vmatmul.mubr.f32.gmra.mrb[2].mxu1 %v300_v54 }
  0x7b   : > { %1053 = vmatpush1.bf16.msra.mxu1 %v1052_v53  ;;  %451 = vmatprep.mubr.f32.mxu1 %v1338_v0 }
  0x7c   : > { %1055 = vmatprep.subr.bf16.mxu1 %v1054_v55  ;;  %792 = vmatmul.mubr.f32.vlgmr.msra.gmra.mrb[0].mxu0 %v1578_v2 }
  0x7d   : > { %1105 = vmatpush1.bf16.msra.mxu0 %v1518_v22  ;;  %797 = vmatprep.mubr.f32.mxu0 %v1338_v0  ;;  %v1066_v22 = vpack.c.bf16 %v1568_v59, %v1559_v51 }
  0x7e   : > { %453 = vmatmul.mubr.f32.vlgmr.msra.gmra.mrb[0].mxu1 %v1578_v2  ;;  %1107 = vmatprep.subr.bf16.mxu0 %v1524_v25 }
  0x7f   : > { %1057 = vmatpush1.bf16.msra.mxu1 %v1056_v56  ;;  %458 = vmatprep.mubr.f32.mxu1 %v1338_v0 }
  0x80   : > { %1059 = vmatprep.subr.bf16.mxu1 %v1058_v57  ;;  %799 = vmatmul.mubr.f32.gmra.mrb[2].mxu0 %v1616_v14 }
  0x81   : > { %1109 = vmatpush1.bf16.msra.mxu0 %v1536_v37  ;;  %885 = vmatprep.mubr.f32.mxu0 %v1338_v0 }
  0x82   : > { %1111 = vmatprep.subr.bf16.mxu0 %v1542_v43  ;;  %460 = vmatmul.mubr.f32.gmra.mrb[2].mxu1 %v1616_v14 }
  0x83   : > { %1061 = vmatpush1.bf16.msra.mxu1 %v1060_v16  ;;  %562 = vmatprep.mubr.f32.mxu1 %v1338_v0 }
  0x84   : > { %1063 = vmatprep.subr.bf16.mxu1 %v1062_v17 }
  0x85   : > { %1113 = vmatpush1.bf16.msra.mxu0 %v1549_v47 }
  0x86   : > { %1115 = vmatprep.subr.bf16.mxu0 %v1555_v50 }
  0x87   : > { %1065 = vmatpush1.bf16.msra.mxu1 %v1064_v18 }
  0x88   : > { %1067 = vmatprep.subr.bf16.mxu1 %v1066_v22 }
  0x89   : > { %1117 = vmatpush1.bf16.msra.mxu0 %v1570_v60 }
  0x8b   : > { %1069 = vmatpush1.bf16.msra.mxu1 %v1068_v23 }
  0x8c   : > { %887 = vmatmul.mubr.f32.vlgmr.msra.gmra.mrb[0].mxu0 %v1578_v2 }
  0x8d   : > { %892 = vmatprep.mubr.f32.mxu0 %v1338_v0 }
  0x8e   : > { %565 = vmatmul.mubr.f32.vlgmr.msra.gmra.mrb[0].mxu1 %v1588_v9 }
  0x8f   : > { %570 = vmatprep.mubr.f32.mxu1 %v1338_v0 }
  0x90   : > { %894 = vmatmul.mubr.f32.gmra.mrb[2].mxu0 %v1616_v14 }
  0x92   : > { %573 = vmatmul.mubr.f32.gmra.mrb[2].mxu1 %v297_v30 }
 0x15f   : > { %v888_v24 = vpop.f32.mrb[0].mxu0 }
 0x160   : > { %v890_v25 = vpop.f32.mrb[1].mxu0 }
 0x161   : > { %v566_v28 = vpop.f32.mrb[0].mxu1 }
 0x162   : > { %v1118_v36 = vadd.f32 %v888_v24, %v566_v28  ;;  %v568_v37 = vpop.f32.mrb[1].mxu1 }
 0x163   : > { %v1119_v38 = vadd.f32 %v890_v25, %v568_v37  ;;  %v895_v42 = vpop.f32.mrb[2].mxu0 }
 0x164   : > { %900 = vst [vmem:[%s176_s17] sm:$0xff] %v1118_v36  ;;  %v897_v43 = vpop.f32.mrb[3].mxu0 }
 0x165   : > { %901 = vst [vmem:[%s176_s17 + $0x8] sm:$0xff] %v1119_v38  ;;  %v574_v0 = vpop.f32.mrb[2].mxu1 }
 0x166   : > { %v1120_v44 = vadd.f32 %v895_v42, %v574_v0  ;;  %v576_v45 = vpop.f32.mrb[3].mxu1 }
 0x167   : > { %v1121_v47 = vadd.f32 %v897_v43, %v576_v45 }
 0x168   : > { %902 = vst [vmem:[%s176_s17 + $0x10] sm:$0xff] %v1120_v44 }
 0x169   : > { %903 = vst [vmem:[%s176_s17 + $0x18] sm:$0xff] %v1121_v47 }
 0x16a   : > { %1273 = shalt.err (!%p1270_p7)
}
 0x16b   : > { %s1274_s24 = scalar_lea.hbm %s1670_s4, 512  ;;  %s1278_s26 = scalar_lea.hbm %s1716_s2, 1024 }
 0x16c   : > { %p1275_p9 = scmp.ne.s32.totalorder %s1670_s4, %s1274_s24  ;;  %p1279_p5 = scmp.lt.u32.totalorder %s1670_s4, %s1716_s2 }
 0x16d   : > { %p1280_p11 = scmp.lt.u32.totalorder %s1278_s26, %s1274_s24  ;;  %p1282_p4 = scmp.lt.u32.totalorder %s1274_s24, %s1670_s4 }
 0x16e   : > { %p1276_p2 = pnand %p1275_p9, %p1448_p12 }
 0x16f   : > { %p1281_p1 = por %p1280_p11, %p1279_p5 }
 0x170   : > { %p1277_p0 = pneg %p1276_p2 }
 0x171   : > { %p1283_p6 = por %p1282_p4, %p1281_p1 }
 0x173   : > { %p1284_p8 = pnand %p1283_p6, %p1277_p0 }
 0x175   : > { %1287 = shalt.err (!%p1284_p8)
}
 0x176   : > { %s1340_s3 = smov 256   ;;  %s1341_s15 = smov 16  }
 0x177   : > { %1144 = dma.vmem_to_hbm [thread:$0]  (%p1448_p12), %s1665_s27, 512, %s1670_s4, %s905_s13, %s1340_s3, %s1340_s3, %s1341_s15  }
 0x178 PF: > { %s934_s17 = sand.u32 1, %s1318_s9   ;;  %p1731_p10 = scmp.ne.s32.totalorder %s1721_s16, 0 }
 0x179   : > { %p1732_p13 = scmp.ge.s32.totalorder %s1330_s12, 2  ;;  %s935_s22 = scalar_lea.sflag [#allocation4], %s934_s17 }
 0x17b   : > { %p1155_p3 = pnand %p1732_p13, %p1731_p10 }
 0x17d   : > { %1313 = dma.done.wait (!%p1155_p3), %s935_s22, 512  }
 0x17e   : > { %1315 = vsyncadd (!%p1155_p3), %s935_s22, 4294966784  ;;  %p16_p7 = scmp.ge.s32.totalorder %s1413_s21, 4   ;;  %s1733_s9 = smov %s1322_s10 }
 0x17f   : > { %s1734_s10 = smov %s1326_s11  ;;  %s1735_s11 = smov %s1444_s8 }
 0x180   : > { %s1736_s12 = smov %s1413_s21  ;;  %18 = sbr.rel (!%p16_p7) target bundleno = 6 (0x6), region = 77 }
 0x187   :  { %940 = vsyncpa [#allocation3], 1 }
 0x188   :  { %942 = vsyncpa [#allocation3 + $0x1], 1 }
 0x189   :  { %943 = vsyncpa [#allocation6], 1 }
 0x18a   :  { %944 = vsyncpa [#allocation4], 1 }
 0x18b   :  { %946 = vsyncpa [#allocation4 + $0x1], 1 }

</bundles_post_ra>
